<compile_context>
chip_gen: v7x
topology: tpu7x:2x2x1
jax: 0.10.0
libtpu: 0.0.40
codegen_flags: <defaults>
</compile_context>

<pallas_src>
import jax
import jax.numpy as jnp
from jax import lax
from jax.experimental import pallas as pl
from jax.experimental.pallas import tpu as pltpu

# ---------------- configuration (small, consistent with the module) ----------
BATCH = 2          # N
C = 4              # number of image locations fed through the Linear layers
IMG_FEAT = 32      # img_feat_size
QUES_FEAT = 32     # ques_feat_size
MFB_K = 4
MFB_O = 64
KO = MFB_K * MFB_O
IS_FIRST = True
EXP_IN = 1.0       # default exp_in=1
EPS = 1e-12        # F.normalize default eps


def mfb_kernel(x_ref, w_ref, b_ref, o_ref):
    # x_ref: (N*C, IMG_FEAT + QUES_FEAT)   fused [img | ques] rows
    # w_ref: (IMG_FEAT + QUES_FEAT, 2*KO)  block-diag [Wi_perm, 0; 0, Wq_perm]
    # b_ref: (1, 2*KO)                     [bi_perm | bq_perm]
    # o_ref: (N, C, MFB_O)
    n_b, c_loc, o_dim = o_ref.shape
    ko = b_ref.shape[1] // 2
    k_pool = ko // o_dim

    x = x_ref[...]                                             # (N*C, 64)

    # Fused proj_i / proj_q: one MXU matmul (contraction depth 64, width 512).
    p = jnp.dot(x, w_ref[...], preferred_element_type=jnp.float32) + b_ref[...]
    p_i = p[:, 0:ko]                                           # (N*C, KO)
    p_q = p[:, ko:2 * ko]                                      # (N*C, KO)

    # Element-wise fusion.
    # TODO(synk): nn.Dropout is identity at inference time; with is_first=True /
    # exp_in=1 both module branches are identical, so no extra work is emitted.
    exp_out = p_i * p_q
    if not IS_FIRST:
        exp_out = exp_out * jnp.float32(EXP_IN)

    # AvgPool1d(K, stride=K) * K == sum over groups of K.  Columns were
    # permuted to (k*O + o) order in the wrapper, so the sum is K-1 cheap
    # lane-slab adds on the VPU (no pooling matmul, no pool-matrix DMA).
    z = exp_out[:, 0:o_dim]
    for k in range(1, k_pool):
        z = z + exp_out[:, k * o_dim:(k + 1) * o_dim]          # (N*C, O)

    # Signed square root: sign(z)*sqrt(|z|)  (single EUP sqrt).
    z = jnp.where(z < 0.0, -1.0, 1.0) * jnp.sqrt(jnp.abs(z))

    # Per-batch L2 normalize over the flattened (C*O) vector:
    # 1/max(||v||, eps) == rsqrt(max(sum(v^2), eps^2)).
    for n in range(n_b):
        zb = z[n * c_loc:(n + 1) * c_loc, :]                   # (C, O)
        ss = jnp.sum(zb * zb)
        inv = lax.rsqrt(jnp.maximum(ss, jnp.float32(EPS * EPS)))
        o_ref[n] = (zb * inv).astype(o_ref.dtype)


def _permute_cols(w):
    # (in, KO) with column order j = o*K + k  ->  j' = k*O + o
    return w.reshape(w.shape[0], MFB_O, MFB_K).transpose(0, 2, 1).reshape(
        w.shape[0], KO)


def _permute_bias(b):
    return b.reshape(MFB_O, MFB_K).T.reshape(KO)


def mfb_forward(img_feat, ques_feat, w_i, b_i, w_q, b_q):
    # In a real model the permuted block-diagonal weight/bias below would be
    # precomputed once at load time; built here per call for self-containment.
    n, c, _ = img_feat.shape
    rows = n * c
    in_tot = IMG_FEAT + QUES_FEAT

    x = jnp.concatenate(
        [img_feat.reshape(rows, IMG_FEAT), ques_feat.reshape(rows, QUES_FEAT)],
        axis=1)                                                # (N*C, 64)

    w_bd = jnp.zeros((in_tot, 2 * KO), jnp.float32)
    w_bd = w_bd.at[:IMG_FEAT, :KO].set(_permute_cols(w_i))
    w_bd = w_bd.at[IMG_FEAT:, KO:].set(_permute_cols(w_q))
    b_bd = jnp.concatenate(
        [_permute_bias(b_i), _permute_bias(b_q)]).reshape(1, 2 * KO)

    return pl.pallas_call(
        mfb_kernel,
        out_shape=jax.ShapeDtypeStruct((n, c, MFB_O), jnp.float32),
        grid_spec=pl.GridSpec(
            grid=(1,),
            in_specs=[
                pl.BlockSpec((rows, in_tot), lambda i: (0, 0)),
                pl.BlockSpec((in_tot, 2 * KO), lambda i: (0, 0)),
                pl.BlockSpec((1, 2 * KO), lambda i: (0, 0)),
            ],
            out_specs=pl.BlockSpec((n, c, MFB_O), lambda i: (0, 0, 0)),
        ),
        compiler_params=pltpu.CompilerParams(
            dimension_semantics=("arbitrary",)),
    )(x, w_bd, b_bd)


def mfb_reference(img_feat, ques_feat, w_i, b_i, w_q, b_q):
    # pure-JAX reference mirroring the PyTorch forward (eval mode)
    n = img_feat.shape[0]
    p_i = img_feat @ w_i + b_i
    p_q = ques_feat @ w_q + b_q
    exp_out = p_i * p_q
    z = exp_out.reshape(n, -1, MFB_O, MFB_K).sum(-1)           # avgpool * K
    z = jnp.sqrt(jnp.maximum(z, 0.0)) - jnp.sqrt(jnp.maximum(-z, 0.0))
    flat = z.reshape(n, -1)
    norm = jnp.sqrt(jnp.sum(flat * flat, axis=1, keepdims=True))
    flat = flat / jnp.maximum(norm, EPS)
    return flat.reshape(n, -1, MFB_O)


if __name__ == "__main__":
    key = jax.random.PRNGKey(0)
    k1, k2, k3, k4, k5, k6 = jax.random.split(key, 6)

    img_feat = jax.random.normal(k1, (BATCH, C, IMG_FEAT), dtype=jnp.float32)
    ques_feat = jax.random.normal(k2, (BATCH, C, QUES_FEAT), dtype=jnp.float32)

    # deterministic parameter init (Linear weights stored transposed: (in, out),
    # output column order = PyTorch's o*K + k)
    w_i = jax.random.normal(k3, (IMG_FEAT, KO), dtype=jnp.float32) * (1.0 / IMG_FEAT ** 0.5)
    b_i = jax.random.normal(k4, (KO,), dtype=jnp.float32) * 0.01
    w_q = jax.random.normal(k5, (QUES_FEAT, KO), dtype=jnp.float32) * (1.0 / QUES_FEAT ** 0.5)
    b_q = jax.random.normal(k6, (KO,), dtype=jnp.float32) * 0.01

    out = mfb_forward(img_feat, ques_feat, w_i, b_i, w_q, b_q)
    out = jax.block_until_ready(out)

    ref = mfb_reference(img_feat, ques_feat, w_i, b_i, w_q, b_q)
    assert out.shape == (BATCH, C, MFB_O)
    assert jnp.allclose(out, ref, atol=1e-4, rtol=1e-4), "mismatch vs reference"

    print("KERNEL_OK")
</pallas_src>

<mosaic_0001>
module attributes {stable_mosaic.version = 11 : i64} {
  func.func @mfb_kernel(%arg0: i32, %arg1: memref<8x64xf32, #tpu.memory_space<vmem>>, %arg2: memref<64x512xf32, #tpu.memory_space<vmem>>, %arg3: memref<1x512xf32, #tpu.memory_space<vmem>>, %arg4: memref<2x4x64xf32, #tpu.memory_space<vmem>>) attributes {dimension_semantics = [#tpu.dimension_semantics<arbitrary>], iteration_bounds = array<i64: 1>, scalar_prefetch = 0 : i64, scratch_operands = 0 : i64, tpu.core_type = #tpu.core_type<tc>, window_params = [{pipeline_mode = #tpu.pipeline_mode<synchronous>, transform_indices = @transform_0, window_bounds = array<i64: 8, 64>}, {pipeline_mode = #tpu.pipeline_mode<synchronous>, transform_indices = @transform_1, window_bounds = array<i64: 64, 512>}, {pipeline_mode = #tpu.pipeline_mode<synchronous>, transform_indices = @transform_2, window_bounds = array<i64: 1, 512>}, {pipeline_mode = #tpu.pipeline_mode<synchronous>, transform_indices = @transform_3, window_bounds = array<i64: 2, 4, 64>}]} {
    %c0 = arith.constant 0 : index
    %c0_0 = arith.constant 0 : index
    %0 = vector.load %arg1[%c0, %c0_0] : memref<8x64xf32, #tpu.memory_space<vmem>>, vector<8x64xf32>
    %c0_1 = arith.constant 0 : index
    %c0_2 = arith.constant 0 : index
    %1 = vector.load %arg2[%c0_1, %c0_2] : memref<64x512xf32, #tpu.memory_space<vmem>>, vector<64x512xf32>
    %cst = arith.constant dense<0.000000e+00> : vector<8x512xf32>
    %2 = tpu.matmul %0, %1, %cst {dimension_numbers = #tpu.dot_dimension_numbers<[1], [0], [0], [1], [0, 0, 1, 1], [], []>} : vector<8x64xf32>, vector<64x512xf32>, vector<8x512xf32> -> vector<8x512xf32>
    %c0_3 = arith.constant 0 : index
    %c0_4 = arith.constant 0 : index
    %3 = vector.load %arg3[%c0_3, %c0_4] : memref<1x512xf32, #tpu.memory_space<vmem>>, vector<1x512xf32>
    %4 = vector.broadcast %3 : vector<1x512xf32> to vector<8x512xf32>
    %5 = arith.addf %2, %4 : vector<8x512xf32>
    %6 = vector.extract_strided_slice %5 {offsets = [0, 0], sizes = [8, 256], strides = [1, 1]} : vector<8x512xf32> to vector<8x256xf32>
    %7 = vector.extract_strided_slice %5 {offsets = [0, 256], sizes = [8, 256], strides = [1, 1]} : vector<8x512xf32> to vector<8x256xf32>
    %8 = arith.mulf %6, %7 : vector<8x256xf32>
    %9 = vector.extract_strided_slice %8 {offsets = [0, 0], sizes = [8, 64], strides = [1, 1]} : vector<8x256xf32> to vector<8x64xf32>
    %10 = vector.extract_strided_slice %8 {offsets = [0, 64], sizes = [8, 64], strides = [1, 1]} : vector<8x256xf32> to vector<8x64xf32>
    %11 = arith.addf %9, %10 : vector<8x64xf32>
    %12 = vector.extract_strided_slice %8 {offsets = [0, 128], sizes = [8, 64], strides = [1, 1]} : vector<8x256xf32> to vector<8x64xf32>
    %13 = arith.addf %11, %12 : vector<8x64xf32>
    %14 = vector.extract_strided_slice %8 {offsets = [0, 192], sizes = [8, 64], strides = [1, 1]} : vector<8x256xf32> to vector<8x64xf32>
    %15 = arith.addf %13, %14 : vector<8x64xf32>
    %cst_5 = arith.constant 0.000000e+00 : f32
    %16 = vector.broadcast %cst_5 : f32 to vector<8x64xf32>
    %17 = arith.cmpf olt, %15, %16 : vector<8x64xf32>
    %cst_6 = arith.constant -1.000000e+00 : f32
    %cst_7 = arith.constant 1.000000e+00 : f32
    %18 = vector.broadcast %cst_6 : f32 to vector<8x64xf32>
    %19 = vector.broadcast %cst_7 : f32 to vector<8x64xf32>
    %20 = arith.select %17, %18, %19 : vector<8x64xi1>, vector<8x64xf32>
    %21 = math.absf %15 : vector<8x64xf32>
    %22 = math.sqrt %21 : vector<8x64xf32>
    %23 = arith.mulf %20, %22 : vector<8x64xf32>
    %24 = vector.extract_strided_slice %23 {offsets = [0, 0], sizes = [4, 64], strides = [1, 1]} : vector<8x64xf32> to vector<4x64xf32>
    %25 = arith.mulf %24, %24 : vector<4x64xf32>
    %26 = vector.shape_cast %25 : vector<4x64xf32> to vector<1x4x64xf32>
    %cst_8 = arith.constant dense<0.000000e+00> : vector<1xf32>
    %27 = vector.multi_reduction <add>, %26, %cst_8 [1, 2] : vector<1x4x64xf32> to vector<1xf32>
    %28 = vector.shape_cast %27 : vector<1xf32> to vector<1x1x1xf32>
    %29 = vector.extract %28[0, 0, 0] : f32 from vector<1x1x1xf32>
    %cst_9 = arith.constant 1.000000e-24 : f32
    %30 = arith.maximumf %29, %cst_9 : f32
    %31 = math.rsqrt %30 : f32
    %32 = vector.broadcast %31 : f32 to vector<4x64xf32>
    %33 = arith.mulf %24, %32 : vector<4x64xf32>
    %c0_10 = arith.constant 0 : index
    %c0_11 = arith.constant 0 : index
    %c0_12 = arith.constant 0 : index
    %34 = vector.load %arg4[%c0_10, %c0_11, %c0_12] : memref<2x4x64xf32, #tpu.memory_space<vmem>>, vector<1x4x64xf32>
    %35 = vector.shape_cast %34 : vector<1x4x64xf32> to vector<4x64xf32>
    %36 = vector.shape_cast %33 : vector<4x64xf32> to vector<1x4x64xf32>
    tpu.vector_store %arg4[%c0_10, %c0_11, %c0_12], %36 {strides = array<i32>} : memref<2x4x64xf32, #tpu.memory_space<vmem>>, vector<1x4x64xf32>,
    %37 = vector.extract_strided_slice %23 {offsets = [4, 0], sizes = [4, 64], strides = [1, 1]} : vector<8x64xf32> to vector<4x64xf32>
    %38 = arith.mulf %37, %37 : vector<4x64xf32>
    %39 = vector.shape_cast %38 : vector<4x64xf32> to vector<1x4x64xf32>
    %cst_13 = arith.constant dense<0.000000e+00> : vector<1xf32>
    %40 = vector.multi_reduction <add>, %39, %cst_13 [1, 2] : vector<1x4x64xf32> to vector<1xf32>
    %41 = vector.shape_cast %40 : vector<1xf32> to vector<1x1x1xf32>
    %42 = vector.extract %41[0, 0, 0] : f32 from vector<1x1x1xf32>
    %cst_14 = arith.constant 1.000000e-24 : f32
    %43 = arith.maximumf %42, %cst_14 : f32
    %44 = math.rsqrt %43 : f32
    %45 = vector.broadcast %44 : f32 to vector<4x64xf32>
    %46 = arith.mulf %37, %45 : vector<4x64xf32>
    %c1 = arith.constant 1 : index
    %c0_15 = arith.constant 0 : index
    %c0_16 = arith.constant 0 : index
    %47 = vector.load %arg4[%c1, %c0_15, %c0_16] : memref<2x4x64xf32, #tpu.memory_space<vmem>>, vector<1x4x64xf32>
    %48 = vector.shape_cast %47 : vector<1x4x64xf32> to vector<4x64xf32>
    %49 = vector.shape_cast %46 : vector<4x64xf32> to vector<1x4x64xf32>
    tpu.vector_store %arg4[%c1, %c0_15, %c0_16], %49 {strides = array<i32>} : memref<2x4x64xf32, #tpu.memory_space<vmem>>, vector<1x4x64xf32>,
    return
  }
  func.func @transform_0(%arg0: i32) -> (i32, i32) {
    %c0_i32 = arith.constant 0 : i32
    %c0_i32_0 = arith.constant 0 : i32
    %c0_i32_1 = arith.constant 0 : i32
    return %c0_i32, %c0_i32_0 : i32, i32
  }
  func.func @transform_1(%arg0: i32) -> (i32, i32) {
    %c0_i32 = arith.constant 0 : i32
    %c0_i32_0 = arith.constant 0 : i32
    %c0_i32_1 = arith.constant 0 : i32
    return %c0_i32, %c0_i32_0 : i32, i32
  }
  func.func @transform_2(%arg0: i32) -> (i32, i32) {
    %c0_i32 = arith.constant 0 : i32
    %c0_i32_0 = arith.constant 0 : i32
    %c0_i32_1 = arith.constant 0 : i32
    return %c0_i32, %c0_i32_0 : i32, i32
  }
  func.func @transform_3(%arg0: i32) -> (i32, i32, i32) {
    %c0_i32 = arith.constant 0 : i32
    %c0_i32_0 = arith.constant 0 : i32
    %c0_i32_1 = arith.constant 0 : i32
    %c0_i32_2 = arith.constant 0 : i32
    return %c0_i32, %c0_i32_0, %c0_i32_1 : i32, i32, i32
  }
}

</mosaic_0001>

<bundles_post_ra>
// kernel: tpu_custom_call.1
= control target key start
LH: loop header
LB: loop body
LE: loop exit
PB: predicated region body
PF: predicated region fallthrough
CT: control target
= control target key end

     0   :  { %8 = vsyncpa [#allocation3], 0  ;;  %s538_s0 = inlined_call_operand.hbm [shape: f32[8,64], index: 0, kind: input, shape index: {}]   ;;  %s539_s1 = inlined_call_operand.hbm [shape: f32[64,512], index: 1, kind: input, shape index: {}]   ;;  %s540_s2 = inlined_call_operand.vmem [shape: f32[1,512], index: 2, kind: input, shape index: {}]   ;;  %s541_s3 = inlined_call_operand.hbm [shape: f32[2,4,64], index: 3, kind: output, shape index: {}]  }
   0x1   :  { %9 = vsyncpa [#allocation6], 0 }
   0x2   :  { %10 = vsyncpa [#allocation4], 0  ;;  %s455_s12 = smov [#allocation2]   ;;  %s456_s14 = smov [#allocation5]  }
   0x3   :  { %s17_s13 = sshll.u32 %s455_s12, 4  ;;  %s26_s15 = sshll.u32 %s456_s14, 4  ;;  %s18_s13 = int_to_ptr.vmem [resolvable:$true] %s17_s13  ;;  %s485_s15 = int_to_ptr.vmem [resolvable:$true] %s26_s15 }
   0x4   :  { %s383_s18 = scalar_lea.hbm %s538_s0, 128 }
   0x5   :  { %p384_p0 = scmp.ne.s32.totalorder %s538_s0, %s383_s18  ;;  %p387_p1 = scmp.lt.u32.totalorder %s383_s18, %s538_s0 }
   0x7   :  { %p389_p2 = pnand %p387_p1, %p384_p0 }
   0x9   :  { %392 = shalt.err (!%p389_p2)
}
   0xa   :  { %s393_s23 = scalar_lea.vmem %s18_s13, 128  ;;  %p398_p4 = scmp.lt.s32.totalorder %s18_s13, %s18_s13 }
   0xb   :  { %p394_p3 = scmp.ne.s32.totalorder %s18_s13, %s393_s23  ;;  %p399_p5 = scmp.lt.s32.totalorder %s393_s23, %s393_s23 }
   0xd   :  { %p400_p6 = por %p399_p5, %p398_p4 }
   0xf   :  { %p401_p7 = pnand %p400_p6, %p394_p3 }
  0x11   :  { %404 = shalt.err (!%p401_p7)
}
  0x12   :  { %20 = dma.hbm_to_vmem [thread:$0]  %s538_s0, 128, %s18_s13, [#allocation3]  }
  0x13   :  { %s405_s28 = scalar_lea.hbm %s539_s1, 4096 }
  0x14   :  { %p406_p8 = scmp.ne.s32.totalorder %s539_s1, %s405_s28  ;;  %p409_p9 = scmp.lt.u32.totalorder %s405_s28, %s539_s1 }
  0x16   :  { %p411_p10 = pnand %p409_p9, %p406_p8 }
  0x18   :  { %414 = shalt.err (!%p411_p10)
}
  0x19   :  { %s415_s6 = scalar_lea.vmem %s485_s15, 4096  ;;  %p420_p12 = scmp.lt.s32.totalorder %s485_s15, %s485_s15 }
  0x1a   :  { %p416_p11 = scmp.ne.s32.totalorder %s485_s15, %s415_s6  ;;  %p421_p13 = scmp.lt.s32.totalorder %s415_s6, %s415_s6 }
  0x1c   :  { %p422_p0 = por %p421_p13, %p420_p12 }
  0x1e   :  { %p423_p1 = pnand %p422_p0, %p416_p11 }
  0x20   :  { %426 = shalt.err (!%p423_p1)
}
  0x21   :  { %s457_s0 = smov 512   ;;  %s458_s7 = smov 32  }
  0x22   :  { %32 = dma.hbm_to_vmem [thread:$0]  %s539_s1, 4096, %s485_s15, [#allocation6], %s457_s0, %s457_s0, %s458_s7  }
  0x23   :  { %449 = dma.done.wait [#allocation3], 128  }
  0x24   :  { %450 = vsyncadd [#allocation3], 4294967168 }
  0x25   :  { %451 = dma.done.wait [#allocation6], 4096  }
  0x26   :  { %452 = vsyncadd [#allocation6], 4294963200  ;;  %v459_v0 = vmov 0.0   ;;  %v43_v1 = vld [vmem:[#allocation5 + $0x8] sm:$0xff]  ;;  %v45_v3 = vld [vmem:[#allocation5 + $0x18] sm:$0xff]  ;;  %vm96_vm0 = vcmask 523264   ;;  %v76_v50 = vlaneseq }
  0x27   :  { %164 = vmatprep.mubr.f32.mxu0 %v459_v0  ;;  %235 = vmatprep.mubr.f32.mxu1 %v459_v0  ;;  %v47_v2 = vld [vmem:[#allocation5 + $0x28] sm:$0xff]  ;;  %v49_v5 = vld [vmem:[#allocation5 + $0x38] sm:$0xff]  ;;  %v42_v6 = vld [vmem:[#allocation5] sm:$0xff]  ;;  %s460_s11 = smov 64   ;;  %vm267_vm4 = vcmask 519168   ;;  %s463_s17 = smov [#allocation7]  }
  0x28   :  { %v327_v4 = vpack.c.bf16 %v47_v2, %v43_v1  ;;  %v46_v7 = vld [vmem:[#allocation5 + $0x20] sm:$0xff]  ;;  %v343_v8 = vpack.c.bf16 %v49_v5, %v45_v3  ;;  %v44_v10 = vld [vmem:[#allocation5 + $0x10] sm:$0xff]  ;;  %v51_v12 = vld [vmem:[#allocation5 + $0x48] sm:$0xff]  ;;  %v77_v51 = vshrl.u32 %v76_v50, 7  ;;  %s462_s12 = smov 1e-24  }
  0x29   :  { %v329_v9 = vpack.c.bf16 %v46_v7, %v42_v6  ;;  %v48_v11 = vld [vmem:[#allocation5 + $0x30] sm:$0xff]  ;;  %v55_v14 = vld [vmem:[#allocation5 + $0x68] sm:$0xff]  ;;  %v53_v15 = vld [vmem:[#allocation5 + $0x58] sm:$0xff]  ;;  %s312_s18 = sshll.u32 %s463_s17, 4  ;;  %vm305_vm5 = vcmask 523268   ;;  %s313_s18 = int_to_ptr.vmem [resolvable:$true] %s312_s18 }
  0x2a   :  { %328 = vmatprep.subr.bf16.mxu0 %v327_v4  ;;  %v345_v13 = vpack.c.bf16 %v48_v11, %v44_v10  ;;  %v57_v16 = vld [vmem:[#allocation5 + $0x78] sm:$0xff]  ;;  %344 = vmatprep.subr.bf16.mxu1 %v343_v8  ;;  %v331_v17 = vpack.c.bf16 %v55_v14, %v51_v12  ;;  %v50_v19 = vld [vmem:[#allocation5 + $0x40] sm:$0xff]  ;;  %v52_v21 = vld [vmem:[#allocation5 + $0x50] sm:$0xff]  ;;  %v78_v52 = vsub.s32 0, %v77_v51  ;;  %v86_v54 = vsub.s32 2, %v77_v51  ;;  %s427_s20 = scalar_lea.vmem %s313_s18, 128  ;;  %p432_p3 = scmp.lt.s32.totalorder %s313_s18, %s313_s18 }
  0x2b   :  { %330 = vmatpush1.bf16.msra.mxu0 %v329_v9  ;;  %v347_v18 = vpack.c.bf16 %v57_v16, %v53_v15  ;;  %v54_v20 = vld [vmem:[#allocation5 + $0x60] sm:$0xff]  ;;  %v56_v23 = vld [vmem:[#allocation5 + $0x70] sm:$0xff]  ;;  %v59_v24 = vld [vmem:[#allocation5 + $0x88] sm:$0xff]  ;;  %v82_v55 = vsub.s32 1, %v77_v51  ;;  %v90_v56 = vsub.s32 3, %v77_v51  ;;  %p428_p2 = scmp.ne.s32.totalorder %s313_s18, %s427_s20  ;;  %p433_p4 = scmp.lt.s32.totalorder %s427_s20, %s427_s20 }
  0x2c   :  { %346 = vmatpush1.bf16.msra.mxu1 %v345_v13  ;;  %v333_v22 = vpack.c.bf16 %v54_v20, %v50_v19  ;;  %v63_v25 = vld [vmem:[#allocation5 + $0xa8] sm:$0xff]  ;;  %332 = vmatprep.subr.bf16.mxu0 %v331_v17  ;;  %v349_v26 = vpack.c.bf16 %v56_v23, %v52_v21  ;;  %v61_v28 = vld [vmem:[#allocation5 + $0x98] sm:$0xff]  ;;  %v58_v30 = vld [vmem:[#allocation5 + $0x80] sm:$0xff]  ;;  %v461_v17 = vmov 1.0  }
  0x2d   :  { %348 = vmatprep.subr.bf16.mxu1 %v347_v18  ;;  %v335_v27 = vpack.c.bf16 %v63_v25, %v59_v24  ;;  %v65_v29 = vld [vmem:[#allocation5 + $0xb8] sm:$0xff]  ;;  %v62_v32 = vld [vmem:[#allocation5 + $0xa0] sm:$0xff]  ;;  %v60_v33 = vld [vmem:[#allocation5 + $0x90] sm:$0xff]  ;;  %p434_p5 = por %p433_p4, %p432_p3 }
  0x2e   :  { %v351_v31 = vpack.c.bf16 %v65_v29, %v61_v28  ;;  %v64_v34 = vld [vmem:[#allocation5 + $0xb0] sm:$0xff]  ;;  %v337_v35 = vpack.c.bf16 %v62_v32, %v58_v30  ;;  %v67_v36 = vld [vmem:[#allocation5 + $0xc8] sm:$0xff]  ;;  %v69_v38 = vld [vmem:[#allocation5 + $0xd8] sm:$0xff] }
  0x2f   :  { %334 = vmatpush1.bf16.msra.mxu0 %v333_v22  ;;  %v71_v37 = vld [vmem:[#allocation5 + $0xe8] sm:$0xff]  ;;  %v353_v39 = vpack.c.bf16 %v64_v34, %v60_v33  ;;  %v73_v41 = vld [vmem:[#allocation5 + $0xf8] sm:$0xff]  ;;  %v66_v42 = vld [vmem:[#allocation5 + $0xc0] sm:$0xff]  ;;  %p435_p6 = pnand %p434_p5, %p428_p2 }
  0x30   :  { %350 = vmatpush1.bf16.msra.mxu1 %v349_v26  ;;  %336 = vmatprep.subr.bf16.mxu0 %v335_v27  ;;  %v339_v40 = vpack.c.bf16 %v71_v37, %v67_v36  ;;  %v70_v43 = vld [vmem:[#allocation5 + $0xe0] sm:$0xff]  ;;  %v355_v44 = vpack.c.bf16 %v73_v41, %v69_v38  ;;  %v68_v45 = vld [vmem:[#allocation5 + $0xd0] sm:$0xff]  ;;  %v41_v49 = vld [vmem:[#allocation2] sm:$0xff] }
  0x31   :  { %352 = vmatprep.subr.bf16.mxu1 %v351_v31  ;;  %v72_v46 = vld [vmem:[#allocation5 + $0xf0] sm:$0xff]  ;;  %v341_v47 = vpack.c.bf16 %v70_v43, %v66_v42  ;;  %v74_v53 = vld [vmem:[%s540_s2] sm:$0xf] }
  0x32   :  { %v357_v48 = vpack.c.bf16 %v72_v46, %v68_v45  ;;  %v79_v57 = vrot.slane %v74_v53, %v78_v52  ;;  %v87_v58 = vrot.slane %v74_v53, %v86_v54  ;;  %v83_v59 = vrot.slane %v74_v53, %v82_v55 }
  0x33   :  { %338 = vmatpush1.bf16.msra.mxu0 %v337_v35  ;;  %v91_v60 = vrot.slane %v74_v53, %v90_v56 }
  0x34   :  { %354 = vmatpush1.bf16.msra.mxu1 %v353_v39  ;;  %340 = vmatprep.subr.bf16.mxu0 %v339_v40 }
  0x35   :  { %356 = vmatprep.subr.bf16.mxu1 %v355_v44 }
  0x37   :  { %342 = vmatpush1.bf16.msra.mxu0 %v341_v47 }
  0x38   :  { %358 = vmatpush1.bf16.msra.mxu1 %v357_v48 }
  0x3a   :  { %325 = vmatmul.mubr.msk.f32.vlgmr.msra.gmra.mrb[0].mxu0 %vm96_vm0, %v41_v49 }
  0x3b   :  { %326 = vmatmul.mubr.msk.f32.vlgmr.msra.gmra.mrb[0].mxu1 %vm96_vm0, %v41_v49 }
 0x10d   :  { %v166_v61 = vpop.f32.mrb[0].mxu0 }
 0x10e   :  { %v167_v62 = vadd.f32 %v166_v61, %v79_v57  ;;  %v237_v63 = vpop.f32.mrb[0].mxu1  ;;  %v168_v0 = vpop.f32.mrb[1].mxu0 }
 0x10f   :  { %v238_v1 = vadd.f32 %v237_v63, %v87_v58  ;;  %v169_v2 = vadd.f32 %v168_v0, %v83_v59  ;;  %v239_v3 = vpop.f32.mrb[1].mxu1 }
 0x110   :  { %v240_v4 = vadd.f32 %v239_v3, %v91_v60 }
 0x111   :  { %v242_v5 = vmul.f32 %v238_v1, %v167_v62 }
 0x112   :  { %v243_v6 = vmul.f32 %v240_v4, %v169_v2 }
 0x113   :  { %245 = vrot.lane.b32.xlu0 %v242_v5, %s460_s11 }
 0x117   :  { %251 = vrot.lane.b32.xlu0 %v243_v6, %s460_s11 }
 0x185   :  { %v246_v7 = vpop.permute.xlu0 %245 }
 0x186   :  { %v248_v8 = vadd.f32 %v246_v7, %v242_v5 }
 0x188   :  { %v249_v9 = vadd.f32 %v248_v8, %v243_v6 }
 0x189   :  { %v252_v10 = vpop.permute.xlu0 %251 }
 0x18a   :  { %v254_v11 = vadd.f32 %v252_v10, %v249_v9 }
 0x18c   :  { %v257_v12 = vand.u32 2147483647, %v254_v11  ;;  %vm255_vm1 = vcmp.lt.f32.partialorder %v254_v11, 0.0 }
 0x18d   :  { %v256_v18 = vsel %vm255_vm1, -1.0, %v461_v17 }
 0x18e   :  { %377 = vrsqrt.f32 %v257_v12  ;;  %vm260_vm2 = vcmp.eq.f32.partialorder %v257_v12, inf  ;;  %v263_v15 = vand.u32 2147483648, %v257_v12  ;;  %vm262_vm3 = vcmp.eq.f32.partialorder %v257_v12, 0.0 }
 0x198   :  { %v378_v13 = vpop.eup %377 }
 0x199   :  { %v259_v14 = vmul.f32 %v378_v13, %v257_v12 }
 0x19b   :  { %v261_v16 = vsel %vm260_vm2, %v257_v12, %v259_v14 }
 0x19c   :  { %v264_v19 = vsel %vm262_vm3, %v263_v15, %v261_v16 }
 0x19d   :  { %v265_v20 = vmul.f32 %v264_v19, %v256_v18 }
 0x19f   :  { %v266_v21 = vmul.f32 %v265_v20, %v265_v20 }
 0x1a1   :  { %v268_v22 = vsel %vm267_vm4, %v266_v21, 0.0  ;;  %v286_v23 = vrot.slane %v266_v21, 4 }
 0x1a2   :  { %269 = vadd.xlane.f32.xlu1 %v268_v22 }
 0x1a3   :  { %v288_v24 = vsel %vm267_vm4, %v286_v23, 0.0 }
 0x1a6   :  { %289 = vadd.xlane.f32.xlu1 %v288_v24 }
 0x22f   :  { %v270_v25 = vpop.xlane.xlu1 %269 }
 0x230   :  { %v271_v26 = vrot.slane %v270_v25, 4 }
 0x232   :  { %v272_v27 = vadd.f32 %v271_v26, %v270_v25 }
 0x233   :  { %v290_v32 = vpop.xlane.xlu1 %289 }
 0x234   :  { %v273_v28 = vrot.slane %v272_v27, 2  ;;  %v291_v33 = vrot.slane %v290_v32, 4 }
 0x236   :  { %v274_v29 = vadd.f32 %v273_v28, %v272_v27  ;;  %v292_v34 = vadd.f32 %v291_v33, %v290_v32 }
 0x238   :  { %v275_v30 = vrot.slane %v274_v29, 1  ;;  %v293_v35 = vrot.slane %v292_v34, 2 }
 0x23a   :  { %v276_v31 = vadd.f32 %v275_v30, %v274_v29  ;;  %v294_v37 = vadd.f32 %v293_v35, %v292_v34 }
 0x23c   :  { %359 = vpush %v276_v31  ;;  %v295_v38 = vrot.slane %v294_v37, 1 }
 0x23e   :  { %v296_v40 = vadd.f32 %v295_v38, %v294_v37 }
 0x26d   :  { %s360_s2 = spop %359 }
 0x26e   :  { %s278_s13 = smax.f32 %s462_s12, %s360_s2 }
 0x26f   :  { %v279_v36 = vstv %s278_s13 }
 0x270   :  { %379 = vrsqrt.f32 %v279_v36 }
 0x27a   :  { %v380_v39 = vpop.eup %379 }
 0x27b   :  { %361 = vpush %v380_v39 }
 0x27c   :  { %363 = vpush %v296_v40 }
 0x2ac   :  { %s362_s14 = spop %361 }
 0x2ad   :  { %v282_v41 = vstv %s362_s14  ;;  %s364_s15 = spop %363 }
 0x2ae   :  { %v283_v42 = vmul.f32 %v282_v41, %v265_v20  ;;  %s298_s16 = smax.f32 %s462_s12, %s364_s15 }
 0x2af   :  { %v299_v43 = vstv %s298_s16 }
 0x2b0   :  { %284 = vst.msk [vmem:[#allocation7] sm:$0xf] %vm267_vm4, %v283_v42  ;;  %381 = vrsqrt.f32 %v299_v43 }
 0x2ba   :  { %v382_v44 = vpop.eup %381 }
 0x2bb   :  { %365 = vpush %v382_v44 }
 0x2ec   :  { %s366_s19 = spop %365 }
 0x2ed   :  { %v302_v45 = vstv %s366_s19 }
 0x2ee   :  { %v303_v46 = vmul.f32 %v302_v45, %v265_v20 }
 0x2f0   :  { %306 = vst.msk [vmem:[#allocation7] sm:$0xf0] %vm305_vm5, %v303_v46 }
 0x2f1   :  { %438 = shalt.err (!%p435_p6)
}
 0x2f2   :  { %s439_s23 = scalar_lea.hbm %s541_s3, 128 }
 0x2f3   :  { %p440_p7 = scmp.ne.s32.totalorder %s541_s3, %s439_s23  ;;  %p443_p8 = scmp.lt.u32.totalorder %s439_s23, %s541_s3 }
 0x2f5   :  { %p445_p9 = pnand %p443_p8, %p440_p7 }
 0x2f7   :  { %448 = shalt.err (!%p445_p9)
}
 0x2f8   :  { %s464_s28 = smov 4  }
 0x2f9   :  { %318 = dma.vmem_to_hbm [thread:$0]  %s313_s18, 128, %s541_s3, [#allocation4], %s460_s11, %s460_s11, %s464_s28  }
 0x2fa   :  { %453 = dma.done.wait [#allocation4], 128  }
 0x2fb   :  { %454 = vsyncadd [#allocation4], 4294967168 }
 0x2fc   :  { %322 = vsyncpa [#allocation3], 1 }
 0x2fd   :  { %323 = vsyncpa [#allocation6], 1 }
 0x2fe   :  { %324 = vsyncpa [#allocation4], 1 }

</bundles_post_ra>
